<compile_context>
chip_gen: v7x
topology: tpu7x:2x2x1
jax: 0.10.0
libtpu: 0.0.40
codegen_flags: <defaults>
</compile_context>

<pallas_src>
import jax
import jax.numpy as jnp
import numpy as np
from jax.experimental import pallas as pl
from jax.experimental.pallas import tpu as pltpu


def film_apply_kernel(x_ref, scale_ref, shift_ref, o_ref):
    # x_ref:     (ROWS_TILE, T_TILE)  tile of the flattened (B*C, T) input
    # scale_ref: (ROWS_TILE, 1)       fused per-row scale = g * rstd      (f32)
    # shift_ref: (ROWS_TILE, 1)       fused per-row shift = b - mean*scale (f32)
    o_ref[...] = (x_ref[...] * scale_ref[...] + shift_ref[...]).astype(o_ref.dtype)


def _round_up(n: int, m: int) -> int:
    return -(-n // m) * m


def _choose_tiles(rows: int, t: int, itemsize: int, target_bytes: int):
    """rows is a multiple of 8, t a multiple of 128.  Pick (rt, tt) dividing them."""
    # Lane axis first: largest multiple of 128 dividing t, capped by the block budget.
    tt_cap = max(128, (target_bytes // itemsize) // 128 * 128)
    tt = min(t, tt_cap)
    tt -= tt % 128
    while t % tt != 0:
        tt -= 128
    # Sublane axis: largest multiple of 8 dividing rows with rt*tt*itemsize <= target.
    rt_cap = max(8, (target_bytes // (tt * itemsize)) // 8 * 8)
    rt = min(rows, rt_cap)
    rt -= rt % 8
    rt = max(rt, 8)
    while rows % rt != 0:
        rt -= 8
    # Keep the grid >= 2 steps when possible (v7x has 2 TensorCores sharing HBM).
    if rows // rt == 1 and t // tt == 1 and rows >= 16:
        half = max(8, (rt // 2) - (rt // 2) % 8)
        while rows % half != 0:
            half -= 8
        rt = half
    return rt, tt


def film_forward(x, cond, weight, bias, *, use_bn: bool = True, eps: float = 1e-5,
                 target_block_bytes: int = 2 << 20):
    """x: (B, C, T), cond: (B, D), weight: (2C, D), bias: (2C,). Returns (B, C, T)."""
    B, C, T = x.shape

    # ---- adaptor (tiny D -> 2C matmul) in the wrapper; split into gamma/beta halves.
    cond32 = cond.astype(jnp.float32)
    w32 = weight.astype(jnp.float32)
    bias32 = bias.astype(jnp.float32)
    g = cond32 @ w32[:C].T + bias32[:C]          # (B, C)
    b = cond32 @ w32[C:].T + bias32[C:]          # (B, C)

    # ---- BatchNorm1d(affine=False), training-mode batch stats, ONE pass over x.
    if use_bn:
        n = B * T
        s1 = jnp.sum(x, axis=(0, 2), dtype=jnp.float32)               # (C,)
        s2 = jnp.sum(jnp.square(x), axis=(0, 2), dtype=jnp.float32)   # (C,)
        mean = s1 / n
        var = jnp.maximum(s2 / n - mean * mean, 0.0)   # biased var (training-mode BN)
        rstd = jax.lax.rsqrt(var + eps)
        scale = g * rstd[None, :]                                      # (B, C)
        shift = b - mean[None, :] * scale                              # (B, C)
    else:
        scale, shift = g, b

    # ---- flatten (B, C) -> rows; pad to sublane/lane-dense extents. --------------
    rows = B * C
    rows_pad = _round_up(rows, 8)
    t_pad = _round_up(T, 128)

    x2 = x.reshape(rows, T)
    scale2 = scale.reshape(rows, 1)              # kept f32 on purpose
    shift2 = shift.reshape(rows, 1)
    needs_pad = (rows_pad != rows) or (t_pad != T)
    if needs_pad:
        x2 = jnp.pad(x2, ((0, rows_pad - rows), (0, t_pad - T)))
        scale2 = jnp.pad(scale2, ((0, rows_pad - rows), (0, 0)))
        shift2 = jnp.pad(shift2, ((0, rows_pad - rows), (0, 0)))

    itemsize = jnp.dtype(x.dtype).itemsize
    rt, tt = _choose_tiles(rows_pad, t_pad, itemsize, target_block_bytes)
    grid = (rows_pad // rt, t_pad // tt)         # T-tile axis last / innermost

    x_spec = pl.BlockSpec((rt, tt), lambda r, t: (r, t))
    p_spec = pl.BlockSpec((rt, 1), lambda r, t: (r, 0))   # constant across inner t
    out_spec = pl.BlockSpec((rt, tt), lambda r, t: (r, t))

    cost = pl.CostEstimate(
        flops=2 * rows_pad * t_pad,
        transcendentals=0,
        bytes_accessed=2 * rows_pad * t_pad * itemsize + 2 * rows_pad * 4,
    )

    out2 = pl.pallas_call(
        film_apply_kernel,
        out_shape=jax.ShapeDtypeStruct((rows_pad, t_pad), x.dtype),
        grid=grid,
        in_specs=[x_spec, p_spec, p_spec],
        out_specs=out_spec,
        compiler_params=pltpu.CompilerParams(
            dimension_semantics=("parallel", "parallel")),
        cost_estimate=cost,
    )(x2, scale2, shift2)

    if needs_pad:
        out2 = out2[:rows, :T]
    return out2.reshape(B, C, T)


def film_reference(x, cond, weight, bias, *, use_bn: bool = True, eps: float = 1e-5):
    """Pure-JAX reference mirroring the PyTorch forward (training-mode BN)."""
    C = x.shape[1]
    gb = cond @ weight.T + bias
    g = gb[:, :C][:, :, None]
    b = gb[:, C:][:, :, None]
    if use_bn:
        mean = jnp.mean(x, axis=(0, 2), keepdims=True)
        var = jnp.mean((x - mean) ** 2, axis=(0, 2), keepdims=True)
        x = (x - mean) * jax.lax.rsqrt(var + eps)
    return x * g + b


if __name__ == "__main__":
    # Shapes consistent with the module: cond_dim = NUM_IRS = 3 (IR families).
    # T = 200 is deliberately NOT a multiple of 128 to exercise the pad-and-slice path;
    # rows = B*C = 32 gives a 2-step grid after the >=2-steps adjustment.
    B, C, T = 2, 16, 200
    cond_dim = 3

    key = jax.random.PRNGKey(0)
    kx, kc, kw, kb = jax.random.split(key, 4)

    x = jax.random.normal(kx, (B, C, T), dtype=jnp.float32)
    cond = jax.random.normal(kc, (B, cond_dim), dtype=jnp.float32)

    # Deterministic synthetic parameters for nn.Linear(cond_dim, 2*C).
    bound = 1.0 / np.sqrt(cond_dim)
    weight = jax.random.uniform(kw, (2 * C, cond_dim), minval=-bound, maxval=bound,
                                dtype=jnp.float32)
    bias = jax.random.uniform(kb, (2 * C,), minval=-bound, maxval=bound,
                              dtype=jnp.float32)

    out = jax.block_until_ready(film_forward(x, cond, weight, bias, use_bn=True))
    ref = film_reference(x, cond, weight, bias, use_bn=True)
    np.testing.assert_allclose(np.asarray(out), np.asarray(ref), rtol=5e-4, atol=1e-4)

    # Also exercise the use_bn=False path.
    out2 = jax.block_until_ready(film_forward(x, cond, weight, bias, use_bn=False))
    ref2 = film_reference(x, cond, weight, bias, use_bn=False)
    np.testing.assert_allclose(np.asarray(out2), np.asarray(ref2), rtol=5e-4, atol=1e-4)

    print("KERNEL_OK")
</pallas_src>

<mosaic_0001>
module attributes {stable_mosaic.version = 11 : i64} {
  func.func @film_apply_kernel(%arg0: i32, %arg1: i32, %arg2: memref<16x256xf32, #tpu.memory_space<vmem>>, %arg3: memref<16x1xf32, #tpu.memory_space<vmem>>, %arg4: memref<16x1xf32, #tpu.memory_space<vmem>>, %arg5: memref<16x256xf32, #tpu.memory_space<vmem>>) attributes {dimension_semantics = [#tpu.dimension_semantics<parallel>, #tpu.dimension_semantics<parallel>], iteration_bounds = array<i64: 2, 1>, scalar_prefetch = 0 : i64, scratch_operands = 0 : i64, tpu.core_type = #tpu.core_type<tc>, window_params = [{transform_indices = @transform_0, window_bounds = array<i64: 16, 256>}, {transform_indices = @transform_1, window_bounds = array<i64: 16, 1>}, {transform_indices = @transform_2, window_bounds = array<i64: 16, 1>}, {transform_indices = @transform_3, window_bounds = array<i64: 16, 256>}]} {
    %c0 = arith.constant 0 : index
    %c0_0 = arith.constant 0 : index
    %0 = vector.load %arg2[%c0, %c0_0] : memref<16x256xf32, #tpu.memory_space<vmem>>, vector<16x256xf32>
    %c0_1 = arith.constant 0 : index
    %c0_2 = arith.constant 0 : index
    %1 = vector.load %arg3[%c0_1, %c0_2] : memref<16x1xf32, #tpu.memory_space<vmem>>, vector<16x1xf32>
    %2 = vector.broadcast %1 : vector<16x1xf32> to vector<16x256xf32>
    %3 = arith.mulf %0, %2 : vector<16x256xf32>
    %c0_3 = arith.constant 0 : index
    %c0_4 = arith.constant 0 : index
    %4 = vector.load %arg4[%c0_3, %c0_4] : memref<16x1xf32, #tpu.memory_space<vmem>>, vector<16x1xf32>
    %5 = vector.broadcast %4 : vector<16x1xf32> to vector<16x256xf32>
    %6 = arith.addf %3, %5 : vector<16x256xf32>
    %c0_5 = arith.constant 0 : index
    %c0_6 = arith.constant 0 : index
    %7 = vector.load %arg5[%c0_5, %c0_6] : memref<16x256xf32, #tpu.memory_space<vmem>>, vector<16x256xf32>
    tpu.vector_store %arg5[%c0_5, %c0_6], %6 {strides = array<i32>} : memref<16x256xf32, #tpu.memory_space<vmem>>, vector<16x256xf32>,
    return
  }
  func.func @transform_0(%arg0: i32, %arg1: i32) -> (i32, i32) {
    %c0_i32 = arith.constant 0 : i32
    return %arg0, %arg1 : i32, i32
  }
  func.func @transform_1(%arg0: i32, %arg1: i32) -> (i32, i32) {
    %c0_i32 = arith.constant 0 : i32
    %c0_i32_0 = arith.constant 0 : i32
    return %arg0, %c0_i32 : i32, i32
  }
  func.func @transform_2(%arg0: i32, %arg1: i32) -> (i32, i32) {
    %c0_i32 = arith.constant 0 : i32
    %c0_i32_0 = arith.constant 0 : i32
    return %arg0, %c0_i32 : i32, i32
  }
  func.func @transform_3(%arg0: i32, %arg1: i32) -> (i32, i32) {
    %c0_i32 = arith.constant 0 : i32
    return %arg0, %arg1 : i32, i32
  }
}

</mosaic_0001>

<bundles_post_ra>
// kernel: tpu_custom_call.1
= control target key start
LH: loop header
LB: loop body
LE: loop exit
PB: predicated region body
PF: predicated region fallthrough
CT: control target
= control target key end

     0   :  { %8 = vsyncpa [#allocation3], 0  ;;  %s716_s0 = inlined_call_operand.vmem [shape: f32[32,256], index: 0, kind: input, shape index: {}]   ;;  %s717_s1 = inlined_call_operand.vmem [shape: f32[32,1], index: 1, kind: input, shape index: {}]   ;;  %s718_s2 = inlined_call_operand.vmem [shape: f32[32,1], index: 2, kind: input, shape index: {}]   ;;  %s719_s3 = inlined_call_operand.hbm [shape: f32[32,256], index: 3, kind: output, shape index: {}]  }
   0x1   :  { %10 = vsyncpa [#allocation3 + $0x1], 0  ;;  %s596_s12 = smov 0   ;;  %s598_s13 = smov 0  }
   0x2   :  { %s600_s14 = smov 0   ;;  %s602_s15 = smov 0  }
   0x3   :  { %s604_s16 = smov 0   ;;  %s606_s17 = smov 0  }
   0x4 LB: > { %s410_s18 = sadd.s32 4294967295, %s570_s17   ;;  %s411_s19 = sadd.s32 4294967294, %s570_s17   ;;  %s570_s17 = sphi %s606_s17, %s16_s17   ;;  %s566_s16 = sphi %s604_s16, %s726_s16   ;;  %s562_s15 = sphi %s602_s15, %s725_s15   ;;  %s558_s14 = sphi %s600_s14, %s724_s14   ;;  %s554_s13 = sphi %s598_s13, %s723_s13   ;;  %s550_s12 = sphi %s596_s12, %s722_s12  }
   0x5   : > { %s28_s20 = sadd.s32 1, %s566_s16  ;;  %s117_s21 = sadd.s32 1, %s558_s14 }
   0x6   : > { %p30_p0 = scmp.ge.s32.totalorder %s28_s20, 2  ;;  %p127_p1 = scmp.ne.s32.totalorder %s558_s14, %s554_s13 }
   0x7   : > { %p128_p2 = scmp.eq.s32.totalorder %s410_s18, 1  ;;  %p133_p3 = scmp.ne.s32.totalorder %s554_s13, %s550_s12 }
   0x8   : > { %s728_s20 = smov (%p30_p0, %s28_s20), 0  ;;  %p134_p5 = scmp.eq.s32.totalorder %s411_s19, 1 }
   0x9   : > { %p636_p4 = por %p128_p2, %p127_p1  ;;  %s112_s23 = ssub.s32 %s566_s16, %s728_s20 }
   0xa   : > { %p414_p6 = scmp.ge.s32.totalorder %s570_s17, 1  ;;  %p115_p7 = scmp.eq.s32.totalorder %s112_s23, 0 }
   0xb   : > { %p643_p8 = por %p134_p5, %p133_p3  ;;  %p185_p9 = scmp.lt.s32.totalorder %s570_s17, 3 }
   0xc   : > { %s649_s25 = scalar_select %p115_p7, %s558_s14, %s117_s21  }
   0xd   : > { %p186_p10 = pnand %p414_p6, %p185_p9 }
   0xe   : > { %s416_s26 = sshll.u32 (!%p186_p10), %s562_s15, 1  ;;  %v572_v0 = vmov (!%p186_p10), 0   ;;  %s221_s11 = sand.u32 (!%p186_p10), 1, %s554_s13  }
   0xf   : > { %189 = sbr.rel (%p186_p10) target bundleno = 178 (0xb2), region = 32  ;;  %491 = vset.pattern.permute.xlu1 (!%p186_p10), %v572_v0  ;;  %490 = vset.pattern.permute.xlu0 (!%p186_p10), %v572_v0  ;;  %p226_p11 = scmp.lt.s32.totalorder (!%p186_p10), %s416_s26, 3 }
  0x10   : > { %s415_s18 = sshll.u32 (!%p186_p10), %s221_s11, 5  ;;  %s431_s23 = sshll.u32 (!%p186_p10), %s562_s15, 9 }
  0x11   : > { %s223_s19 = scalar_lea.vmem (!%p186_p10), [#allocation2], %s415_s18  ;;  %s668_s28 = scalar_lea.hbm (!%p186_p10), %s719_s3, %s431_s23 }
  0x12   : > { %s307_s21 = sshll.u32 (!%p186_p10), %s223_s19, 4  ;;  %s670_s15 = scalar_lea.sflag (!%p186_p10), [#allocation3], %s221_s11  ;;  %s663_s21 = int_to_ptr.vmem [resolvable:$true] %s307_s21 }
  0x13   : > { %s492_s29 = scalar_lea.vmem (!%p186_p10), %s663_s21, 512 }
  0x14   : > { %p493_p12 = scmp.ne.s32.totalorder (!%p186_p10), %s663_s21, %s492_s29 }
  0x16   : > { %s730_s26 = smov (!%p226_p11, %s416_s26), 3  ;;  %p494_p13 = pnand %p493_p12, %p636_p4 }
  0x17   : > { %s420_s27 = sshll.u32 %s730_s26, 3  ;;  %s429_s7 = sshll.u32 %s730_s26, 4 }
  0x18   : > { %s246_s30 = scalar_lea.vmem %s718_s2, %s420_s27  ;;  %s240_s6 = scalar_lea.vmem %s717_s1, %s420_s27 }
  0x19   : > { %v270_v1 = vld [vmem:[%s246_s30] sm:$0xff]  ;;  %v271_v3 = vld [vmem:[%s246_s30 + $0x8] sm:$0xff]  ;;  %s233_s10 = scalar_lea.vmem %s716_s0, %s429_s7  ;;  %p495_p0 = pneg %p494_p13 }
  0x1a   : > { %v254_v2 = vld [vmem:[%s240_s6] sm:$0xff]  ;;  %274 = vperm.xlu1 %491, %v270_v1   ;;  %v255_v4 = vld [vmem:[%s240_s6 + $0x8] sm:$0xff]  ;;  %v252_v11 = vld [vmem:[%s233_s10 + $0x10] sm:$0xff]  ;;  %s573_s30 = smov [#allocation2]  }
  0x1b   : > { %258 = vperm.xlu0 %490, %v254_v2   ;;  %v250_v5 = vld [vmem:[%s233_s10] sm:$0xff]  ;;  %v251_v6 = vld [vmem:[%s233_s10 + $0x8] sm:$0xff]  ;;  %v253_v12 = vld [vmem:[%s233_s10 + $0x18] sm:$0xff]  ;;  %s496_s4 = sshll.u32 %s573_s30, 4  ;;  %s497_s4 = int_to_ptr.vmem [resolvable:$false] %s496_s4 }
  0x1c   : > { %s498_s5 = scalar_lea.vmem %s497_s4, 1024  ;;  %p499_p1 = scmp.lt.s32.totalorder %s663_s21, %s497_s4 }
  0x1d   : > { %p500_p2 = scmp.lt.s32.totalorder %s498_s5, %s492_s29 }
  0x1e   : > { %279 = vperm.xlu1 %491, %v271_v3  }
  0x1f   : > { %263 = vperm.xlu0 %490, %v255_v4   ;;  %p501_p3 = por %p500_p2, %p499_p1 }
  0x21   : > { %p502_p5 = pnand %p501_p3, %p495_p0 }
  0x99   : > { %v275_v7 = vpop.permute.xlu1 %274 }
  0x9a   : > { %v259_v8 = vpop.permute.xlu0 %258 }
  0x9b   : > { %v266_v9 = vmul.f32 %v259_v8, %v250_v5  ;;  %v267_v10 = vmul.f32 %v259_v8, %v251_v6 }
  0x9d   : > { %v282_v13 = vadd.f32 %v275_v7, %v266_v9  ;;  %v283_v14 = vadd.f32 %v275_v7, %v267_v10  ;;  %v280_v18 = vpop.permute.xlu1 %279 }
  0x9e   : > { %v264_v15 = vpop.permute.xlu0 %263 }
  0x9f   : > { %286 = vst [vmem:[%s223_s19] sm:$0xff] %v282_v13  ;;  %287 = vst [vmem:[%s223_s19 + $0x8] sm:$0xff] %v283_v14  ;;  %v268_v16 = vmul.f32 %v264_v15, %v252_v11  ;;  %v269_v17 = vmul.f32 %v264_v15, %v253_v12 }
  0xa1   : > { %v284_v19 = vadd.f32 %v280_v18, %v268_v16  ;;  %v285_v20 = vadd.f32 %v280_v18, %v269_v17 }
  0xa3   : > { %288 = vst [vmem:[%s223_s19 + $0x10] sm:$0xff] %v284_v19  ;;  %289 = vst [vmem:[%s223_s19 + $0x18] sm:$0xff] %v285_v20 }
  0xa4   : > { %505 = shalt.err (!%p502_p5)
}
  0xa5   : > { %s506_s6 = scalar_lea.hbm %s668_s28, 512  ;;  %s510_s9 = scalar_lea.hbm %s719_s3, 1024 }
  0xa6   : > { %p507_p6 = scmp.ne.s32.totalorder %s668_s28, %s506_s6  ;;  %p511_p10 = scmp.lt.u32.totalorder %s668_s28, %s719_s3 }
  0xa7   : > { %p512_p11 = scmp.lt.u32.totalorder %s510_s9, %s506_s6  ;;  %p514_p13 = scmp.lt.u32.totalorder %s506_s6, %s668_s28 }
  0xa8   : > { %p508_p7 = pnand %p507_p6, %p636_p4 }
  0xa9   : > { %p513_p12 = por %p512_p11, %p511_p10 }
  0xaa   : > { %p509_p9 = pneg %p508_p7 }
  0xab   : > { %p515_p0 = por %p514_p13, %p513_p12 }
  0xad   : > { %p516_p1 = pnand %p515_p0, %p509_p9 }
  0xaf   : > { %519 = shalt.err (!%p516_p1)
}
  0xb0   : > { %s574_s18 = smov 256   ;;  %s575_s19 = smov 16  }
  0xb1   : > { %432 = dma.vmem_to_hbm [thread:$0]  (%p636_p4), %s663_s21, 512, %s668_s28, %s670_s15, %s574_s18, %s574_s18, %s575_s19  }
  0xb2 PF: > { %p438_p2 = scmp.ge.s32.totalorder %s570_s17, 2  ;;  %s322_s23 = sand.u32 1, %s550_s12  }
  0xb3   : > { %s323_s26 = scalar_lea.sflag [#allocation3], %s322_s23 }
  0xb4   : > { %p435_p3 = pnand %p438_p2, %p643_p8 }
  0xb6   : > { %545 = dma.done.wait (!%p435_p3), %s323_s26, 512  }
  0xb7   : > { %547 = vsyncadd (!%p435_p3), %s323_s26, 4294966784  ;;  %s16_s17 = sadd.s32 1, %s570_s17   ;;  %s722_s12 = smov %s554_s13 }
  0xb8   : > { %p13_p5 = scmp.ge.s32.totalorder %s16_s17, 4   ;;  %s723_s13 = smov %s558_s14 }
  0xb9   : > { %s724_s14 = smov %s649_s25  ;;  %s725_s15 = smov %s566_s16 }
  0xba   : > { %s726_s16 = smov %s728_s20  ;;  %15 = sbr.rel (!%p13_p5) target bundleno = 4 (0x4), region = 73 }
  0xc1   :  { %328 = vsyncpa [#allocation3], 1 }
  0xc2   :  { %330 = vsyncpa [#allocation3 + $0x1], 1 }

</bundles_post_ra>
